<compile_context>
chip_gen: v6e
topology: v6e:2x2x1
jax: 0.10.0
libtpu: 0.0.40
codegen_flags: <defaults>
</compile_context>

<pallas_src>
import jax
import jax.numpy as jnp
from jax.experimental import pallas as pl
from jax.experimental.pallas import tpu as pltpu


def _round_up(x, m):
    return ((x + m - 1) // m) * m


def _onehot_gather_kernel(idx_ref, table_ref, out_ref):
    # idx_ref:   (R, 1)         int32  row indices for this block
    # table_ref: (V_pad, D_pad) f32    full padded table, resident in VMEM
    # out_ref:   (R, D_pad)     f32    gathered rows (lane-dense store)
    r = idx_ref.shape[0]
    v = table_ref.shape[0]
    idx = idx_ref[...]                                          # (R, 1)
    iota = jax.lax.broadcasted_iota(jnp.int32, (r, v), 1)       # (R, V_pad)
    one_hot = (idx == iota).astype(table_ref.dtype)             # (R, V_pad)
    out_ref[...] = jnp.dot(
        one_hot, table_ref[...], preferred_element_type=jnp.float32
    ).astype(out_ref.dtype)


def embedding_lookup(indices, table, *, rows_per_block=256):
    """Embedding lookup: indices (B, F) int -> (B, F, D) rows of table (V, D)."""
    B, F = indices.shape
    V, D = table.shape
    n = B * F

    # Clamp indices into range (torch raises on OOB; jnp.take clips — we clip).
    flat_idx = jnp.clip(indices.reshape(-1).astype(jnp.int32), 0, V - 1)

    # Pad table: V to a sublane multiple, D to a lane-dense multiple of 128.
    V_pad = _round_up(V, 8)
    D_pad = _round_up(D, 128)
    table_p = table
    if (V_pad, D_pad) != (V, D):
        table_p = jnp.zeros((V_pad, D_pad), table.dtype).at[:V, :D].set(table)

    itemsize = jnp.dtype(table_p.dtype).itemsize
    table_bytes = V_pad * D_pad * itemsize
    if table_bytes > 48 * 1024 * 1024:
        # TODO(synk): manual-DMA (pl.ANY + make_async_copy) row-gather fallback
        # for tables that do not fit in VMEM (>~48 MiB, v7x-safe budget).
        raise NotImplementedError(
            "embedding table too large for the VMEM-resident one-hot gather kernel"
        )

    # Rows per grid step: multiple of 8 (sublane fill); shrink for tiny inputs.
    R = rows_per_block
    if n <= R:
        R = _round_up(n, 8)
    n_pad = _round_up(n, R)
    if n_pad != n:
        flat_idx = jnp.pad(flat_idx, (0, n_pad - n))  # pad with valid index 0
    idx_col = flat_idx.reshape(n_pad, 1)
    n_blocks = n_pad // R

    out_block_bytes = R * D_pad * itemsize
    idx_block_bytes = R * 4
    vmem_limit = 2 * table_bytes + 2 * out_block_bytes + 2 * idx_block_bytes + (4 << 20)
    vmem_limit = int(min(max(vmem_limit, 16 << 20), 100 << 20))

    cost = pl.CostEstimate(
        flops=2 * n_pad * V_pad * D_pad,
        transcendentals=0,
        bytes_accessed=table_bytes + n_pad * 4 + n_pad * D_pad * itemsize,
    )

    out_flat = pl.pallas_call(
        _onehot_gather_kernel,
        out_shape=jax.ShapeDtypeStruct((n_pad, D_pad), table_p.dtype),
        grid_spec=pltpu.PrefetchScalarGridSpec(
            num_scalar_prefetch=0,
            grid=(n_blocks,),
            in_specs=[
                # Per-step (R, 1) slab of indices.
                pl.BlockSpec((R, 1), lambda i: (i, 0)),
                # Full padded table, same block every step -> resident in VMEM.
                pl.BlockSpec((V_pad, D_pad), lambda i: (0, 0)),
            ],
            out_specs=pl.BlockSpec((R, D_pad), lambda i: (i, 0)),
        ),
        compiler_params=pltpu.CompilerParams(
            dimension_semantics=("parallel",),
            vmem_limit_bytes=vmem_limit,
        ),
        cost_estimate=cost,
    )(idx_col, table_p)

    return out_flat[:n, :D].reshape(B, F, D)


def make_embedding_weight(key, field_dims, embed_dim, dtype=jnp.float32):
    """Deterministic xavier_uniform init, matching torch.nn.init.xavier_uniform_."""
    bound = (6.0 / (field_dims + embed_dim)) ** 0.5
    return jax.random.uniform(
        key, (field_dims, embed_dim), dtype=dtype, minval=-bound, maxval=bound
    )


if __name__ == "__main__":
    # Small shapes consistent with the module's forward:
    # x: (batch_size, num_fields) long tensor of indices in [0, field_dims).
    batch_size = 2
    num_fields = 8
    field_dims = 32
    embed_dim = 32

    key = jax.random.PRNGKey(0)
    k_w, k_x = jax.random.split(key)

    weight = make_embedding_weight(k_w, field_dims, embed_dim)
    x = jax.random.randint(k_x, (batch_size, num_fields), 0, field_dims, dtype=jnp.int32)

    out = embedding_lookup(x, weight)
    out = jax.block_until_ready(out)

    # Reference check against plain JAX gather.
    ref = jnp.take(weight, x.reshape(-1), axis=0).reshape(batch_size, num_fields, embed_dim)
    assert out.shape == (batch_size, num_fields, embed_dim)
    assert out.dtype == weight.dtype
    assert jnp.allclose(out, ref), "Pallas embedding lookup mismatch vs reference"

    print("KERNEL_OK")
</pallas_src>

<mosaic_0001>
module attributes {stable_mosaic.version = 11 : i64} {
  func.func @_onehot_gather_kernel(%arg0: i32, %arg1: memref<16x1xi32, #tpu.memory_space<vmem>>, %arg2: memref<32x128xf32, #tpu.memory_space<vmem>>, %arg3: memref<16x128xf32, #tpu.memory_space<vmem>>) attributes {dimension_semantics = [#tpu.dimension_semantics<parallel>], iteration_bounds = array<i64: 1>, scalar_prefetch = 0 : i64, scratch_operands = 0 : i64, tpu.core_type = #tpu.core_type<tc>, window_params = [{transform_indices = @transform_0, window_bounds = array<i64: 16, 1>}, {pipeline_mode = #tpu.pipeline_mode<synchronous>, transform_indices = @transform_1, window_bounds = array<i64: 32, 128>}, {transform_indices = @transform_2, window_bounds = array<i64: 16, 128>}]} {
    %c0 = arith.constant 0 : index
    %c0_0 = arith.constant 0 : index
    %0 = vector.load %arg1[%c0, %c0_0] : memref<16x1xi32, #tpu.memory_space<vmem>>, vector<16x1xi32>
    %1 = tpu.iota {dimensions = array<i32: 1>} : vector<16x32xi32>
    %2 = vector.broadcast %0 : vector<16x1xi32> to vector<16x32xi32>
    %3 = arith.cmpi eq, %2, %1 : vector<16x32xi32>
    %4 = arith.extui %3 : vector<16x32xi1> to vector<16x32xi32>
    %5 = arith.sitofp %4 : vector<16x32xi32> to vector<16x32xf32>
    %c0_1 = arith.constant 0 : index
    %c0_2 = arith.constant 0 : index
    %6 = vector.load %arg2[%c0_1, %c0_2] : memref<32x128xf32, #tpu.memory_space<vmem>>, vector<32x128xf32>
    %cst = arith.constant dense<0.000000e+00> : vector<16x128xf32>
    %7 = tpu.matmul %5, %6, %cst {dimension_numbers = #tpu.dot_dimension_numbers<[1], [0], [0], [1], [0, 0, 1, 1], [], []>} : vector<16x32xf32>, vector<32x128xf32>, vector<16x128xf32> -> vector<16x128xf32>
    %c0_3 = arith.constant 0 : index
    %c0_4 = arith.constant 0 : index
    %8 = vector.load %arg3[%c0_3, %c0_4] : memref<16x128xf32, #tpu.memory_space<vmem>>, vector<16x128xf32>
    tpu.vector_store %arg3[%c0_3, %c0_4], %7 {strides = array<i32>} : memref<16x128xf32, #tpu.memory_space<vmem>>, vector<16x128xf32>,
    return
  }
  func.func @transform_0(%arg0: i32) -> (i32, i32) {
    %c0_i32 = arith.constant 0 : i32
    %c0_i32_0 = arith.constant 0 : i32
    return %arg0, %c0_i32 : i32, i32
  }
  func.func @transform_1(%arg0: i32) -> (i32, i32) {
    %c0_i32 = arith.constant 0 : i32
    %c0_i32_0 = arith.constant 0 : i32
    %c0_i32_1 = arith.constant 0 : i32
    return %c0_i32, %c0_i32_0 : i32, i32
  }
  func.func @transform_2(%arg0: i32) -> (i32, i32) {
    %c0_i32 = arith.constant 0 : i32
    %c0_i32_0 = arith.constant 0 : i32
    return %arg0, %c0_i32 : i32, i32
  }
}

</mosaic_0001>

<bundles_post_ra>
// kernel: tpu_custom_call.1
= control target key start
LH: loop header
LB: loop body
LE: loop exit
PB: predicated region body
PF: predicated region fallthrough
CT: control target
= control target key end

     0   :  { %7 = vsyncpa [#allocation3], 0  ;;  %s258_s0 = inlined_call_operand.vmem [shape: s32[16,1], index: 0, kind: input, shape index: {}]   ;;  %s259_s1 = inlined_call_operand.hbm [shape: f32[32,128], index: 1, kind: input, shape index: {}]   ;;  %s260_s2 = inlined_call_operand.hbm [shape: f32[16,128], index: 2, kind: output, shape index: {}]  }
   0x1   :  { %8 = vsyncpa [#allocation4], 0  ;;  %s219_s9 = smov [#allocation2]  }
   0x2   :  { %s16_s10 = sshll.u32 %s219_s9, 4  ;;  %s17_s10 = int_to_ptr.vmem [resolvable:$true] %s16_s10 }
   0x3   :  { %s183_s11 = scalar_lea.vmem %s17_s10, 512  ;;  %p188_p1 = scmp.lt.s32.totalorder %s17_s10, %s17_s10 }
   0x4   :  { %p184_p0 = scmp.ne.s32.totalorder %s17_s10, %s183_s11  ;;  %p189_p2 = scmp.lt.s32.totalorder %s183_s11, %s183_s11 }
   0x6   :  { %p190_p3 = por %p189_p2, %p188_p1 }
   0x8   :  { %p191_p4 = pnand %p190_p3, %p184_p0 }
   0xa   :  { %194 = shalt.err (!%p191_p4)
}
   0xb   :  { %s220_s12 = smov 128   ;;  %s221_s13 = smov 8  }
   0xc   :  { %22 = dma.hbm_to_vmem [thread:$0]  %s259_s1, 512, %s17_s10, [#allocation3], %s220_s12, %s220_s12, %s221_s13  }
   0xd   :  { %215 = dma.done.wait [#allocation3], 512  }
   0xe   :  { %216 = vsyncadd [#allocation3], 4294966784  ;;  %v222_v0 = vmov 0   ;;  %v26_v1 = vld [vmem:[%s258_s0] sm:$0xff]  ;;  %v45_v2 = vld [vmem:[#allocation2 + $0x18] sm:$0xff]  ;;  %v28_v7 = vlaneseq  ;;  %vm46_vm0 = vcmask 261120  }
   0xf   :  { %174 = vset.pattern.permute.xlu0 %v222_v0  ;;  %157 = vmatprep.subr.mxu0 %v45_v2  ;;  %v44_v3 = vld [vmem:[#allocation2 + $0x10] sm:$0xff]  ;;  %v27_v4 = vld [vmem:[%s258_s0 + $0x8] sm:$0xff]  ;;  %v42_v6 = vld [vmem:[#allocation2] sm:$0xff]  ;;  %v223_v10 = vmov 0.0   ;;  %s224_s0 = smov [#allocation5]  }
  0x10   :  { %31 = vperm.xlu0 %174, %v26_v1   ;;  %158 = vmatpush3.msra.mxu0 %v45_v2  ;;  %v43_v5 = vld [vmem:[#allocation2 + $0x8] sm:$0xff]  ;;  %v29_v8 = vand.u32 127, %v28_v7  ;;  %s135_s1 = sshll.u32 %s224_s0, 4  ;;  %s136_s1 = int_to_ptr.vmem [resolvable:$true] %s135_s1 }
  0x11   :  { %159 = vmatprep.subr.mxu0 %v44_v3  ;;  %s195_s20 = scalar_lea.vmem %s136_s1, 256  ;;  %p200_p6 = scmp.lt.s32.totalorder %s136_s1, %s136_s1 }
  0x12   :  { %160 = vmatpush3.msra.mxu0 %v44_v3  ;;  %p196_p5 = scmp.ne.s32.totalorder %s136_s1, %s195_s20  ;;  %p201_p7 = scmp.lt.s32.totalorder %s195_s20, %s195_s20 }
  0x13   :  { %161 = vmatprep.subr.mxu0 %v43_v5 }
  0x14   :  { %34 = vperm.xlu0 %174, %v27_v4   ;;  %162 = vmatpush3.msra.mxu0 %v43_v5  ;;  %p202_p8 = por %p201_p7, %p200_p6 }
  0x15   :  { %163 = vmatprep.subr.mxu0 %v42_v6 }
  0x16   :  { %164 = vmatpush3.msra.mxu0 %v42_v6  ;;  %p203_p9 = pnand %p202_p8, %p196_p5 }
  0x8b   :  { %v32_v9 = vpop.permute.xlu0 %31 }
  0x8c   :  { %vm36_vm1 = vcmp.eq.s32.totalorder %v32_v9, %v29_v8 }
  0x8d   :  { %v147_v11 = vsel %vm36_vm1, 1.0, %v223_v10 }
  0x8e   :  { %165 = vmatprep.mubr.msk.f32.mxu0 %vm46_vm0, %v147_v11 }
  0x8f   :  { %v35_v12 = vpop.permute.xlu0 %34 }
  0x90   :  { %vm37_vm2 = vcmp.eq.s32.totalorder %v35_v12, %v29_v8 }
  0x91   :  { %v148_v13 = vsel %vm37_vm2, 1.0, %v223_v10 }
  0x92   :  { %166 = vmatmul.mubr.msk.f32.vlgmr.msra.gmra.mxu0 %vm46_vm0, %v148_v13 }
 0x152   :  { %v167_v14 = vpop.f32.mrf.mxu0 }
 0x153   :  { %129 = vst [vmem:[#allocation5 + $0x8] sm:$0xff] %v167_v14 }
 0x154   :  { %v119_v15 = vpop.f32.mrf.mxu0 }
 0x155   :  { %128 = vst [vmem:[#allocation5] sm:$0xff] %v119_v15 }
 0x156   :  { %206 = shalt.err (!%p203_p9)
}
 0x157   :  { %141 = dma.vmem_to_hbm [thread:$0]  %s136_s1, 256, %s260_s2, [#allocation4], %s220_s12, %s220_s12, %s221_s13  }
 0x158   :  { %217 = dma.done.wait [#allocation4], 256  }
 0x159   :  { %218 = vsyncadd [#allocation4], 4294967040 }
 0x15a   :  { %145 = vsyncpa [#allocation3], 1 }
 0x15b   :  { %146 = vsyncpa [#allocation4], 1 }

</bundles_post_ra>
